<compile_context>
chip_gen: v7x
topology: tpu7x:2x2x1
jax: 0.10.0
libtpu: 0.0.40
codegen_flags: <defaults>
</compile_context>

<pallas_src>
import jax
import jax.numpy as jnp
from jax.experimental import pallas as pl
from jax.experimental.pallas import tpu as pltpu


# ---------------------------------------------------------------------------
# Tiling helpers
# ---------------------------------------------------------------------------
def _choose_spatial_tile(hw, desired):
    """Return (tp, n_spatial_tiles).

    tp is the full row when hw <= desired, otherwise a multiple of 128
    (preferring an exact divisor of hw).  Never falls back to the full-HW row
    when hw is large (that could blow past v7x's 64 MiB VMEM); instead uses a
    cdiv grid with a masked partial last tile."""
    if hw <= desired:
        return hw, 1
    tp = max(128, (desired // 128) * 128)
    t = tp
    while t >= 128:
        if hw % t == 0:
            return t, hw // t
        t -= 128
    return tp, pl.cdiv(hw, tp)          # masked partial last tile


def _choose_batch_block(n, tp, desired_lanes, max_nb=8):
    """Pack several batch images into one grid step when each image only
    contributes a small spatial tile (amortizes per-step overhead, bigger
    DMAs).  Always picks a divisor of n so the batch grid is exact."""
    cap = max(1, min(max_nb, desired_lanes // max(tp, 1)))
    if cap <= 1 or n <= 1:
        return 1
    for nb in range(min(cap, n), 0, -1):
        if n % nb == 0:
            return nb
    return 1


# ---------------------------------------------------------------------------
# Fused Pallas kernel: the whole block (head branches + all stack layers,
# already folded on the host) is one dot per image tile:
#   out[n, :, p] = W_cat @ concat_b(x_b[n, :, p])      with K = B * C_in
# ---------------------------------------------------------------------------
def _make_fused_block_kernel(num_branches, nb):
    def kernel(*refs):
        x_refs = refs[:num_branches]          # each (nb, C_in, tp)
        w_ref = refs[num_branches]            # (C_out, B*C_in), resident in VMEM
        o_ref = refs[num_branches + 1]        # (nb, C_out, tp)

        w = w_ref[...]                        # hoisted load, reused for all images
        for n in range(nb):                   # small static unroll over images
            xs = [x_refs[b][n] for b in range(num_branches)]
            # Concatenate branches along the channel (sublane) axis so the whole
            # block is a single MXU push with K = B*C_in.
            xcat = xs[0] if num_branches == 1 else jnp.concatenate(xs, axis=0)
            y = jnp.dot(w, xcat, preferred_element_type=jnp.float32)
            o_ref[n] = y.astype(o_ref.dtype)  # one lane-dense store per image

    return kernel


def fused_block_matmul(inputs_nchw, w_cat, *, tp_desired=2048, compute_dtype=None):
    """inputs_nchw: list of B arrays (N, C_in, H, W).
       w_cat: (C_out, B*C_in) fully folded weight (betas, op softmax and the
              entire stack chain already composed in).
       returns (N, C_out, H, W)."""
    B = len(inputs_nchw)
    N, C_in, H, W = inputs_nchw[0].shape
    HW = H * W
    C_out = w_cat.shape[0]
    out_dtype = inputs_nchw[0].dtype

    xs = [x.reshape(N, C_in, HW) for x in inputs_nchw]   # free reshape (NCHW)
    if compute_dtype is not None:
        xs = [x.astype(compute_dtype) for x in xs]
        w_cat = w_cat.astype(compute_dtype)

    tp, grid_hw = _choose_spatial_tile(HW, tp_desired)
    nb = _choose_batch_block(N, tp, tp_desired)
    grid_n = pl.cdiv(N, nb)

    # Put the larger axis first so the grid shards across both v7x TensorCores
    # (harmless on single-TC v5e/v6e).
    hw_major = grid_hw >= grid_n
    if hw_major:
        grid = (grid_hw, grid_n)
        data_map = lambda p, n: (n, 0, p)
        w_map = lambda p, n: (0, 0)
    else:
        grid = (grid_n, grid_hw)
        data_map = lambda n, p: (n, 0, p)
        w_map = lambda n, p: (0, 0)

    in_specs = [pl.BlockSpec((nb, C_in, tp), data_map) for _ in range(B)]
    # Resident weight: constant block index -> DMA'd once, reused every step.
    in_specs.append(pl.BlockSpec(w_cat.shape, w_map))

    x_item = jnp.dtype(xs[0].dtype).itemsize
    w_item = jnp.dtype(w_cat.dtype).itemsize
    o_item = jnp.dtype(out_dtype).itemsize

    # VMEM budget: double-buffered input/output tiles + resident weight +
    # concat temp / f32 accumulator slack.  Cap at 64 MiB (v7x physical VMEM).
    need = 2 * B * nb * C_in * tp * x_item
    need += 2 * nb * C_out * tp * o_item
    need += 2 * C_out * B * C_in * w_item
    need += 4 * nb * max(C_out, B * C_in) * tp * 4
    vmem_limit = int(min(max(2 * need, 32 * 1024 * 1024), 64 * 1024 * 1024))

    cost = pl.CostEstimate(
        flops=int(2 * N * HW * C_out * B * C_in),
        transcendentals=0,
        bytes_accessed=int(B * N * C_in * HW * x_item
                           + N * C_out * HW * o_item
                           + C_out * B * C_in * w_item),
    )

    out = pl.pallas_call(
        _make_fused_block_kernel(B, nb),
        out_shape=jax.ShapeDtypeStruct((N, C_out, HW), out_dtype),
        grid_spec=pltpu.PrefetchScalarGridSpec(
            num_scalar_prefetch=0,
            grid=grid,
            in_specs=in_specs,
            out_specs=pl.BlockSpec((nb, C_out, tp), data_map),
        ),
        compiler_params=pltpu.CompilerParams(
            dimension_semantics=("parallel", "parallel"),
            vmem_limit_bytes=vmem_limit),
        cost_estimate=cost,
    )(*(xs + [w_cat]))
    return out.reshape(N, C_out, H, W)


# ---------------------------------------------------------------------------
# Module-equivalent forward (glue in plain JAX, hot path in the kernel above)
# ---------------------------------------------------------------------------
def _op_weights(alphas, branch_indices, softmax_temp):
    # torch.stack([alphas[i] for i in branch_indices]); softmax(.../temp, dim=-1)
    sel = jnp.stack([alphas[i] for i in branch_indices])
    return jax.nn.softmax(sel / softmax_temp, axis=-1)


def block_forward(inputs_nchw, betas, head_alphas, stack_alphas,
                  head_index, stack_index, block_sub_obj,
                  head_weights, stack_weights, softmax_temp=1.0,
                  tp_desired=2048, compute_dtype=None):
    B = len(inputs_nchw)
    L = len(stack_weights)

    # ---- fold op softmax + betas + the ENTIRE stack chain into one effective
    # weight per branch (valid because every candidate op is linear).
    head_op_w = [_op_weights(head_alphas[b], head_index[b], softmax_temp)
                 for b in range(B)]
    wb = [jnp.einsum('i,icd->cd', head_op_w[b], head_weights[b])
          for b in range(B)]                                   # (C_in, C_out)

    if L > 0:
        stack_op_w = [_op_weights(stack_alphas[l], stack_index[l], softmax_temp)
                      for l in range(L)]
        chain = None
        for l in range(L):
            wl = jnp.einsum('i,icd->cd', stack_op_w[l], stack_weights[l])  # (C,C)
            chain = wl if chain is None else chain @ wl
        m = [betas[b] * (wb[b] @ chain) for b in range(B)]     # (C_in, C_out)
    else:
        stack_op_w = []
        m = [betas[b] * wb[b] for b in range(B)]

    # Kernel weight: concat M_b^T along the contraction axis -> (C_out, B*C_in).
    w_cat = jnp.concatenate([mb.T for mb in m], axis=1)

    # ---- single fused Pallas call: head + all stack layers -----------------
    x_nchw = fused_block_matmul(inputs_nchw, w_cat,
                                tp_desired=tp_desired,
                                compute_dtype=compute_dtype)

    # ---- sub-objective bookkeeping (scalar glue) ----------------------------
    head_sub_obj = [
        jnp.sum(head_op_w[b]
                * jnp.stack([block_sub_obj[0][b][i] for i in head_index[b]]))
        for b in range(B)
    ]
    if L > 0:
        stack_sub_obj = sum(
            jnp.sum(stack_op_w[l]
                    * jnp.stack([block_sub_obj[1][l][i] for i in stack_index[l]]))
            for l in range(L))
    else:
        stack_sub_obj = 0

    return x_nchw, [head_sub_obj, stack_sub_obj]


# ---------------------------------------------------------------------------
# Pure-JAX reference (same math, no Pallas, no folding) for verification
# ---------------------------------------------------------------------------
def block_forward_ref(inputs_nchw, betas, head_alphas, stack_alphas,
                      head_index, stack_index, block_sub_obj,
                      head_weights, stack_weights, softmax_temp=1.0):
    B = len(inputs_nchw)
    head_out = 0.0
    for b in range(B):
        op_w = _op_weights(head_alphas[b], head_index[b], softmax_temp)
        branch = sum(op_w[i] * jnp.einsum('nchw,cd->ndhw',
                                          inputs_nchw[b], head_weights[b][i])
                     for i in range(len(head_index[b])))
        head_out = head_out + betas[b] * branch
    x = head_out
    for l, wl in enumerate(stack_weights):
        op_w = _op_weights(stack_alphas[l], stack_index[l], softmax_temp)
        x = sum(op_w[i] * jnp.einsum('nchw,cd->ndhw', x, wl[i])
                for i in range(len(stack_index[l])))
    return x


# ---------------------------------------------------------------------------
if __name__ == "__main__":
    key = jax.random.PRNGKey(0)
    N, C, H, W = 2, 32, 16, 16         # HW = 256 (lane-dense spatial tiles)
    NUM_BRANCHES = 2                   # head branches (== len(inputs))
    NUM_CANDS = 5                      # total candidate ops before dropping
    NUM_OPS = 3                        # retained ops per MixedOp
    NUM_STACK_LAYERS = 2
    TEMP = 1.0

    ks = jax.random.split(key, 16)
    inputs = [jax.random.normal(ks[b], (N, C, H, W), jnp.float32)
              for b in range(NUM_BRANCHES)]
    betas = jax.random.uniform(ks[4], (NUM_BRANCHES,), jnp.float32)
    head_alphas = [jax.random.normal(ks[5 + b], (NUM_CANDS,), jnp.float32)
                   for b in range(NUM_BRANCHES)]
    stack_alphas = [jax.random.normal(ks[7 + l], (NUM_CANDS,), jnp.float32)
                    for l in range(NUM_STACK_LAYERS)]
    head_index = [[0, 2, 4], [1, 2, 3]]
    stack_index = [[0, 1, 3], [2, 3, 4]]
    block_sub_obj = [
        [jax.random.uniform(ks[9 + b], (NUM_CANDS,), jnp.float32)
         for b in range(NUM_BRANCHES)],
        [jax.random.uniform(ks[11 + l], (NUM_CANDS,), jnp.float32)
         for l in range(NUM_STACK_LAYERS)],
    ]

    # Deterministic candidate-op parameters (bias-free 1x1 convs), stored as
    # (num_ops, C_in, C_out) so op_i(x) == einsum('nchw,cd->ndhw', x, W[i]).
    head_weights = [
        0.1 * jax.random.normal(ks[13 + b], (NUM_OPS, C, C), jnp.float32)
        for b in range(NUM_BRANCHES)
    ]
    stack_weights = [
        0.1 * jax.random.normal(jax.random.fold_in(ks[15], l),
                                (NUM_OPS, C, C), jnp.float32)
        for l in range(NUM_STACK_LAYERS)
    ]

    out, sub_objs = block_forward(inputs, betas, head_alphas, stack_alphas,
                                  head_index, stack_index, block_sub_obj,
                                  head_weights, stack_weights, softmax_temp=TEMP)
    out = jax.block_until_ready(out)
    jax.block_until_ready(sub_objs[0])
    jax.block_until_ready(sub_objs[1])

    ref = block_forward_ref(inputs, betas, head_alphas, stack_alphas,
                            head_index, stack_index, block_sub_obj,
                            head_weights, stack_weights, softmax_temp=TEMP)
    assert out.shape == (N, C, H, W)
    assert jnp.allclose(out, ref, rtol=1e-4, atol=1e-4), "kernel mismatch vs reference"

    print("KERNEL_OK")
</pallas_src>

<mosaic_0001>
module attributes {stable_mosaic.version = 11 : i64} {
  func.func @kernel(%arg0: i32, %arg1: i32, %arg2: memref<2x32x256xf32, #tpu.memory_space<vmem>>, %arg3: memref<2x32x256xf32, #tpu.memory_space<vmem>>, %arg4: memref<32x64xf32, #tpu.memory_space<vmem>>, %arg5: memref<2x32x256xf32, #tpu.memory_space<vmem>>) attributes {dimension_semantics = [#tpu.dimension_semantics<parallel>, #tpu.dimension_semantics<parallel>], iteration_bounds = array<i64: 1, 1>, scalar_prefetch = 0 : i64, scratch_operands = 0 : i64, tpu.core_type = #tpu.core_type<tc>, window_params = [{transform_indices = @transform_0, window_bounds = array<i64: 2, 32, 256>}, {transform_indices = @transform_1, window_bounds = array<i64: 2, 32, 256>}, {pipeline_mode = #tpu.pipeline_mode<synchronous>, transform_indices = @transform_2, window_bounds = array<i64: 32, 64>}, {transform_indices = @transform_3, window_bounds = array<i64: 2, 32, 256>}]} {
    %c0 = arith.constant 0 : index
    %c0_0 = arith.constant 0 : index
    %0 = vector.load %arg4[%c0, %c0_0] : memref<32x64xf32, #tpu.memory_space<vmem>>, vector<32x64xf32>
    %c0_1 = arith.constant 0 : index
    %c0_2 = arith.constant 0 : index
    %c0_3 = arith.constant 0 : index
    %1 = vector.load %arg2[%c0_1, %c0_2, %c0_3] : memref<2x32x256xf32, #tpu.memory_space<vmem>>, vector<1x32x256xf32>
    %2 = vector.shape_cast %1 : vector<1x32x256xf32> to vector<32x256xf32>
    %c0_4 = arith.constant 0 : index
    %c0_5 = arith.constant 0 : index
    %c0_6 = arith.constant 0 : index
    %3 = vector.load %arg3[%c0_4, %c0_5, %c0_6] : memref<2x32x256xf32, #tpu.memory_space<vmem>>, vector<1x32x256xf32>
    %4 = vector.shape_cast %3 : vector<1x32x256xf32> to vector<32x256xf32>
    %5 = tpu.concatenate %2, %4 in 0 : vector<32x256xf32>, vector<32x256xf32> -> vector<64x256xf32>
    %cst = arith.constant dense<0.000000e+00> : vector<32x256xf32>
    %6 = tpu.matmul %0, %5, %cst {dimension_numbers = #tpu.dot_dimension_numbers<[1], [0], [0], [1], [0, 0, 1, 1], [], []>} : vector<32x64xf32>, vector<64x256xf32>, vector<32x256xf32> -> vector<32x256xf32>
    %c0_7 = arith.constant 0 : index
    %c0_8 = arith.constant 0 : index
    %c0_9 = arith.constant 0 : index
    %7 = vector.load %arg5[%c0_7, %c0_8, %c0_9] : memref<2x32x256xf32, #tpu.memory_space<vmem>>, vector<1x32x256xf32>
    %8 = vector.shape_cast %7 : vector<1x32x256xf32> to vector<32x256xf32>
    %9 = vector.shape_cast %6 : vector<32x256xf32> to vector<1x32x256xf32>
    tpu.vector_store %arg5[%c0_7, %c0_8, %c0_9], %9 {strides = array<i32>} : memref<2x32x256xf32, #tpu.memory_space<vmem>>, vector<1x32x256xf32>,
    %c1 = arith.constant 1 : index
    %c0_10 = arith.constant 0 : index
    %c0_11 = arith.constant 0 : index
    %10 = vector.load %arg2[%c1, %c0_10, %c0_11] : memref<2x32x256xf32, #tpu.memory_space<vmem>>, vector<1x32x256xf32>
    %11 = vector.shape_cast %10 : vector<1x32x256xf32> to vector<32x256xf32>
    %c1_12 = arith.constant 1 : index
    %c0_13 = arith.constant 0 : index
    %c0_14 = arith.constant 0 : index
    %12 = vector.load %arg3[%c1_12, %c0_13, %c0_14] : memref<2x32x256xf32, #tpu.memory_space<vmem>>, vector<1x32x256xf32>
    %13 = vector.shape_cast %12 : vector<1x32x256xf32> to vector<32x256xf32>
    %14 = tpu.concatenate %11, %13 in 0 : vector<32x256xf32>, vector<32x256xf32> -> vector<64x256xf32>
    %cst_15 = arith.constant dense<0.000000e+00> : vector<32x256xf32>
    %15 = tpu.matmul %0, %14, %cst_15 {dimension_numbers = #tpu.dot_dimension_numbers<[1], [0], [0], [1], [0, 0, 1, 1], [], []>} : vector<32x64xf32>, vector<64x256xf32>, vector<32x256xf32> -> vector<32x256xf32>
    %c1_16 = arith.constant 1 : index
    %c0_17 = arith.constant 0 : index
    %c0_18 = arith.constant 0 : index
    %16 = vector.load %arg5[%c1_16, %c0_17, %c0_18] : memref<2x32x256xf32, #tpu.memory_space<vmem>>, vector<1x32x256xf32>
    %17 = vector.shape_cast %16 : vector<1x32x256xf32> to vector<32x256xf32>
    %18 = vector.shape_cast %15 : vector<32x256xf32> to vector<1x32x256xf32>
    tpu.vector_store %arg5[%c1_16, %c0_17, %c0_18], %18 {strides = array<i32>} : memref<2x32x256xf32, #tpu.memory_space<vmem>>, vector<1x32x256xf32>,
    return
  }
  func.func @transform_0(%arg0: i32, %arg1: i32) -> (i32, i32, i32) {
    %c0_i32 = arith.constant 0 : i32
    %c0_i32_0 = arith.constant 0 : i32
    return %arg1, %c0_i32, %arg0 : i32, i32, i32
  }
  func.func @transform_1(%arg0: i32, %arg1: i32) -> (i32, i32, i32) {
    %c0_i32 = arith.constant 0 : i32
    %c0_i32_0 = arith.constant 0 : i32
    return %arg1, %c0_i32, %arg0 : i32, i32, i32
  }
  func.func @transform_2(%arg0: i32, %arg1: i32) -> (i32, i32) {
    %c0_i32 = arith.constant 0 : i32
    %c0_i32_0 = arith.constant 0 : i32
    %c0_i32_1 = arith.constant 0 : i32
    return %c0_i32, %c0_i32_0 : i32, i32
  }
  func.func @transform_3(%arg0: i32, %arg1: i32) -> (i32, i32, i32) {
    %c0_i32 = arith.constant 0 : i32
    %c0_i32_0 = arith.constant 0 : i32
    return %arg1, %c0_i32, %arg0 : i32, i32, i32
  }
}

</mosaic_0001>

<bundles_post_ra>
// kernel: tpu_custom_call.1
= control target key start
LH: loop header
LB: loop body
LE: loop exit
PB: predicated region body
PF: predicated region fallthrough
CT: control target
= control target key end

     0   :  { %8 = vsyncpa [#allocation3], 0  ;;  %s572_s0 = inlined_call_operand.hbm [shape: f32[2,32,256], index: 0, kind: input, shape index: {}]   ;;  %s573_s1 = inlined_call_operand.hbm [shape: f32[2,32,256], index: 1, kind: input, shape index: {}]   ;;  %s574_s2 = inlined_call_operand.hbm [shape: f32[32,64], index: 2, kind: input, shape index: {}]   ;;  %s575_s3 = inlined_call_operand.hbm [shape: f32[2,32,256], index: 3, kind: output, shape index: {}]  }
   0x1   :  { %9 = vsyncpa [#allocation6], 0 }
   0x2   :  { %10 = vsyncpa [#allocation4], 0  ;;  %s463_s12 = smov [#allocation5]   ;;  %s464_s14 = smov [#allocation2]  }
   0x3   :  { %s28_s13 = sshll.u32 %s463_s12, 4  ;;  %s16_s15 = sshll.u32 %s464_s14, 4  ;;  %s29_s13 = int_to_ptr.vmem [resolvable:$true] %s28_s13  ;;  %s492_s15 = int_to_ptr.vmem [resolvable:$true] %s16_s15 }
   0x4   :  { %s369_s18 = scalar_lea.hbm %s573_s1, 2048 }
   0x5   :  { %p370_p0 = scmp.ne.s32.totalorder %s573_s1, %s369_s18  ;;  %p373_p1 = scmp.lt.u32.totalorder %s369_s18, %s573_s1 }
   0x7   :  { %p375_p2 = pnand %p373_p1, %p370_p0 }
   0x9   :  { %378 = shalt.err (!%p375_p2)
}
   0xa   :  { %s379_s23 = scalar_lea.vmem %s29_s13, 2048  ;;  %p384_p4 = scmp.lt.s32.totalorder %s29_s13, %s29_s13 }
   0xb   :  { %p380_p3 = scmp.ne.s32.totalorder %s29_s13, %s379_s23  ;;  %p385_p5 = scmp.lt.s32.totalorder %s379_s23, %s379_s23 }
   0xd   :  { %p386_p6 = por %p385_p5, %p384_p4 }
   0xf   :  { %p387_p7 = pnand %p386_p6, %p380_p3 }
  0x11   :  { %390 = shalt.err (!%p387_p7)
}
  0x12   :  { %s465_s24 = smov 256   ;;  %s466_s25 = smov 16  }
  0x13   :  { %34 = dma.hbm_to_vmem [thread:$0]  %s573_s1, 2048, %s29_s13, [#allocation6], %s465_s24, %s465_s24, %s466_s25  }
  0x14   :  { %s391_s30 = scalar_lea.hbm %s572_s0, 2048 }
  0x15   :  { %p392_p8 = scmp.ne.s32.totalorder %s572_s0, %s391_s30  ;;  %p395_p9 = scmp.lt.u32.totalorder %s391_s30, %s572_s0 }
  0x17   :  { %p397_p10 = pnand %p395_p9, %p392_p8 }
  0x19   :  { %400 = shalt.err (!%p397_p10)
}
  0x1a   :  { %s401_s8 = scalar_lea.vmem %s492_s15, 2048  ;;  %p406_p12 = scmp.lt.s32.totalorder %s492_s15, %s492_s15 }
  0x1b   :  { %p402_p11 = scmp.ne.s32.totalorder %s492_s15, %s401_s8  ;;  %p407_p13 = scmp.lt.s32.totalorder %s401_s8, %s401_s8 }
  0x1d   :  { %p408_p0 = por %p407_p13, %p406_p12 }
  0x1f   :  { %p409_p1 = pnand %p408_p0, %p402_p11 }
  0x21   :  { %412 = shalt.err (!%p409_p1)
}
  0x22   :  { %22 = dma.hbm_to_vmem [thread:$0]  %s572_s0, 2048, %s492_s15, [#allocation3], %s465_s24, %s465_s24, %s466_s25  }
  0x23   :  { %s467_s10 = smov [#allocation7]   ;;  %s413_s14 = scalar_lea.hbm %s574_s2, 512 }
  0x24   :  { %s40_s11 = sshll.u32 %s467_s10, 4  ;;  %p414_p2 = scmp.ne.s32.totalorder %s574_s2, %s413_s14  ;;  %s41_s11 = int_to_ptr.vmem [resolvable:$true] %s40_s11 }
  0x25   :  { %p417_p3 = scmp.lt.u32.totalorder %s413_s14, %s574_s2 }
  0x27   :  { %p419_p4 = pnand %p417_p3, %p414_p2 }
  0x29   :  { %422 = shalt.err (!%p419_p4)
}
  0x2a   :  { %s423_s20 = scalar_lea.vmem %s41_s11, 512  ;;  %p428_p6 = scmp.lt.s32.totalorder %s41_s11, %s41_s11 }
  0x2b   :  { %p424_p5 = scmp.ne.s32.totalorder %s41_s11, %s423_s20  ;;  %p429_p7 = scmp.lt.s32.totalorder %s423_s20, %s423_s20 }
  0x2d   :  { %p430_p8 = por %p429_p7, %p428_p6 }
  0x2f   :  { %p431_p9 = pnand %p430_p8, %p424_p5 }
  0x31   :  { %434 = shalt.err (!%p431_p9)
}
  0x32   :  { %s468_s0 = smov 128   ;;  %s469_s15 = smov 8  }
  0x33   :  { %46 = dma.hbm_to_vmem [thread:$0]  %s574_s2, 512, %s41_s11, [#allocation6], %s468_s0, %s468_s0, %s469_s15  }
  0x34   :  { %457 = dma.done.wait [#allocation3], 2048  }
  0x35   :  { %458 = vsyncadd [#allocation3], 4294965248 }
  0x36   :  { %459 = dma.done.wait [#allocation6], 2560  }
  0x37   :  { %460 = vsyncadd [#allocation6], 4294964736  ;;  %v470_v0 = vmov 0.0   ;;  %v61_v1 = vld [vmem:[#allocation2 + $0x8] sm:$0xff]  ;;  %v63_v2 = vld [vmem:[#allocation2 + $0x18] sm:$0xff]  ;;  %vm76_vm0 = vcmask 523264  }
  0x38   :  { %153 = vmatprep.mubr.f32.mxu0 %v470_v0  ;;  %268 = vmatprep.mubr.f32.mxu1 %v470_v0  ;;  %v188_v3 = vld [vmem:[#allocation2 + $0x48] sm:$0xff]  ;;  %v328_v4 = vpack.c.bf16 %v63_v2, %v61_v1  ;;  %v190_v5 = vld [vmem:[#allocation2 + $0x58] sm:$0xff]  ;;  %v60_v6 = vld [vmem:[#allocation2] sm:$0xff]  ;;  %s471_s2 = smov [#allocation8]  }
  0x39   :  { %v62_v7 = vld [vmem:[#allocation2 + $0x10] sm:$0xff]  ;;  %v344_v8 = vpack.c.bf16 %v190_v5, %v188_v3  ;;  %v187_v10 = vld [vmem:[#allocation2 + $0x40] sm:$0xff]  ;;  %v65_v12 = vld [vmem:[#allocation2 + $0x28] sm:$0xff]  ;;  %s307_s23 = sshll.u32 %s471_s2, 4  ;;  %s308_s23 = int_to_ptr.vmem [resolvable:$true] %s307_s23 }
  0x3a   :  { %v330_v9 = vpack.c.bf16 %v62_v7, %v60_v6  ;;  %v189_v11 = vld [vmem:[#allocation2 + $0x50] sm:$0xff]  ;;  %329 = vmatprep.subr.bf16.mxu0 %v328_v4  ;;  %v67_v14 = vld [vmem:[#allocation2 + $0x38] sm:$0xff]  ;;  %v192_v15 = vld [vmem:[#allocation2 + $0x68] sm:$0xff]  ;;  %s435_s26 = scalar_lea.vmem %s308_s23, 2048  ;;  %p440_p11 = scmp.lt.s32.totalorder %s308_s23, %s308_s23 }
  0x3b   :  { %v346_v13 = vpack.c.bf16 %v189_v11, %v187_v10  ;;  %v194_v16 = vld [vmem:[#allocation2 + $0x78] sm:$0xff]  ;;  %345 = vmatprep.subr.bf16.mxu1 %v344_v8  ;;  %v332_v17 = vpack.c.bf16 %v67_v14, %v65_v12  ;;  %v64_v19 = vld [vmem:[#allocation2 + $0x20] sm:$0xff]  ;;  %v66_v20 = vld [vmem:[#allocation2 + $0x30] sm:$0xff]  ;;  %p436_p10 = scmp.ne.s32.totalorder %s308_s23, %s435_s26  ;;  %p441_p12 = scmp.lt.s32.totalorder %s435_s26, %s435_s26 }
  0x3c   :  { %331 = vmatpush1.bf16.msra.mxu0 %v330_v9  ;;  %v348_v18 = vpack.c.bf16 %v194_v16, %v192_v15  ;;  %v191_v21 = vld [vmem:[#allocation2 + $0x60] sm:$0xff]  ;;  %v334_v22 = vpack.c.bf16 %v66_v20, %v64_v19  ;;  %v193_v23 = vld [vmem:[#allocation2 + $0x70] sm:$0xff]  ;;  %v69_v24 = vld [vmem:[#allocation5 + $0x8] sm:$0xff] }
  0x3d   :  { %347 = vmatpush1.bf16.msra.mxu1 %v346_v13  ;;  %v71_v25 = vld [vmem:[#allocation5 + $0x18] sm:$0xff]  ;;  %333 = vmatprep.subr.bf16.mxu0 %v332_v17  ;;  %v350_v26 = vpack.c.bf16 %v193_v23, %v191_v21  ;;  %v197_v28 = vld [vmem:[#allocation5 + $0x48] sm:$0xff]  ;;  %v68_v30 = vld [vmem:[#allocation5] sm:$0xff]  ;;  %p442_p13 = por %p441_p12, %p440_p11 }
  0x3e   :  { %349 = vmatprep.subr.bf16.mxu1 %v348_v18  ;;  %v336_v27 = vpack.c.bf16 %v71_v25, %v69_v24  ;;  %v199_v29 = vld [vmem:[#allocation5 + $0x58] sm:$0xff]  ;;  %v70_v32 = vld [vmem:[#allocation5 + $0x10] sm:$0xff]  ;;  %v196_v33 = vld [vmem:[#allocation5 + $0x40] sm:$0xff] }
  0x3f   :  { %v352_v31 = vpack.c.bf16 %v199_v29, %v197_v28  ;;  %v198_v34 = vld [vmem:[#allocation5 + $0x50] sm:$0xff]  ;;  %v338_v35 = vpack.c.bf16 %v70_v32, %v68_v30  ;;  %v73_v36 = vld [vmem:[#allocation5 + $0x28] sm:$0xff]  ;;  %v75_v37 = vld [vmem:[#allocation5 + $0x38] sm:$0xff]  ;;  %p443_p0 = pnand %p442_p13, %p436_p10 }
  0x40   :  { %335 = vmatpush1.bf16.msra.mxu0 %v334_v22  ;;  %v201_v38 = vld [vmem:[#allocation5 + $0x68] sm:$0xff]  ;;  %v354_v39 = vpack.c.bf16 %v198_v34, %v196_v33  ;;  %v340_v40 = vpack.c.bf16 %v75_v37, %v73_v36  ;;  %v203_v41 = vld [vmem:[#allocation5 + $0x78] sm:$0xff]  ;;  %v72_v42 = vld [vmem:[#allocation5 + $0x20] sm:$0xff] }
  0x41   :  { %351 = vmatpush1.bf16.msra.mxu1 %v350_v26  ;;  %337 = vmatprep.subr.bf16.mxu0 %v336_v27  ;;  %v74_v43 = vld [vmem:[#allocation5 + $0x30] sm:$0xff]  ;;  %v356_v44 = vpack.c.bf16 %v203_v41, %v201_v38  ;;  %v200_v45 = vld [vmem:[#allocation5 + $0x60] sm:$0xff]  ;;  %v57_v50 = vld [vmem:[#allocation7 + $0x8] sm:$0xff] }
  0x42   :  { %353 = vmatprep.subr.bf16.mxu1 %v352_v31  ;;  %v202_v46 = vld [vmem:[#allocation5 + $0x70] sm:$0xff]  ;;  %v342_v47 = vpack.c.bf16 %v74_v43, %v72_v42  ;;  %v56_v49 = vld [vmem:[#allocation7] sm:$0xff]  ;;  %v59_v52 = vld [vmem:[#allocation7 + $0x18] sm:$0xff] }
  0x43   :  { %v358_v48 = vpack.c.bf16 %v202_v46, %v200_v45  ;;  %v58_v51 = vld [vmem:[#allocation7 + $0x10] sm:$0xff] }
  0x44   :  { %339 = vmatpush1.bf16.msra.mxu0 %v338_v35 }
  0x45   :  { %355 = vmatpush1.bf16.msra.mxu1 %v354_v39  ;;  %341 = vmatprep.subr.bf16.mxu0 %v340_v40 }
  0x46   :  { %357 = vmatprep.subr.bf16.mxu1 %v356_v44 }
  0x48   :  { %343 = vmatpush1.bf16.msra.mxu0 %v342_v47 }
  0x49   :  { %359 = vmatpush1.bf16.msra.mxu1 %v358_v48 }
  0x4b   :  { %320 = vmatmul.mubr.msk.f32.vlgmr.msra.gmra.mrb[0].mxu0 %vm76_vm0, %v56_v49 }
  0x4c   :  { %324 = vmatmul.mubr.msk.f32.vlgmr.msra.gmra.mrb[0].mxu1 %vm76_vm0, %v56_v49  ;;  %159 = vmatprep.mubr.f32.mxu0 %v470_v0 }
  0x4d   :  { %274 = vmatprep.mubr.f32.mxu1 %v470_v0 }
  0x4f   :  { %321 = vmatmul.mubr.msk.f32.gmra.mrb[2].mxu0 %vm76_vm0, %v57_v50 }
  0x50   :  { %325 = vmatmul.mubr.msk.f32.gmra.mrb[2].mxu1 %vm76_vm0, %v57_v50  ;;  %165 = vmatprep.mubr.f32.mxu0 %v470_v0 }
  0x51   :  { %280 = vmatprep.mubr.f32.mxu1 %v470_v0 }
  0x53   :  { %322 = vmatmul.mubr.msk.f32.gmra.mrb[4].mxu0 %vm76_vm0, %v58_v51 }
  0x54   :  { %326 = vmatmul.mubr.msk.f32.gmra.mrb[4].mxu1 %vm76_vm0, %v58_v51  ;;  %171 = vmatprep.mubr.f32.mxu0 %v470_v0 }
  0x55   :  { %286 = vmatprep.mubr.f32.mxu1 %v470_v0 }
  0x57   :  { %323 = vmatmul.mubr.msk.f32.gmra.mrb[6].mxu0 %vm76_vm0, %v59_v52 }
  0x58   :  { %327 = vmatmul.mubr.msk.f32.gmra.mrb[6].mxu1 %vm76_vm0, %v59_v52 }
 0x11e   :  { %v155_v53 = vpop.f32.mrb[0].mxu0 }
 0x11f   :  { %178 = vst [vmem:[#allocation8] sm:$0xff] %v155_v53  ;;  %v270_v54 = vpop.f32.mrb[0].mxu1  ;;  %v157_v55 = vpop.f32.mrb[1].mxu0 }
 0x120   :  { %294 = vst [vmem:[#allocation8 + $0x40] sm:$0xff] %v270_v54  ;;  %179 = vst [vmem:[#allocation8 + $0x8] sm:$0xff] %v157_v55  ;;  %v272_v56 = vpop.f32.mrb[1].mxu1 }
 0x121   :  { %295 = vst [vmem:[#allocation8 + $0x48] sm:$0xff] %v272_v56 }
 0x122   :  { %v161_v57 = vpop.f32.mrb[2].mxu0 }
 0x123   :  { %180 = vst [vmem:[#allocation8 + $0x10] sm:$0xff] %v161_v57  ;;  %v276_v58 = vpop.f32.mrb[2].mxu1  ;;  %v163_v59 = vpop.f32.mrb[3].mxu0 }
 0x124   :  { %296 = vst [vmem:[#allocation8 + $0x50] sm:$0xff] %v276_v58  ;;  %181 = vst [vmem:[#allocation8 + $0x18] sm:$0xff] %v163_v59  ;;  %v278_v60 = vpop.f32.mrb[3].mxu1 }
 0x125   :  { %297 = vst [vmem:[#allocation8 + $0x58] sm:$0xff] %v278_v60 }
 0x126   :  { %v167_v61 = vpop.f32.mrb[4].mxu0 }
 0x127   :  { %182 = vst [vmem:[#allocation8 + $0x20] sm:$0xff] %v167_v61  ;;  %v282_v62 = vpop.f32.mrb[4].mxu1  ;;  %v169_v63 = vpop.f32.mrb[5].mxu0 }
 0x128   :  { %298 = vst [vmem:[#allocation8 + $0x60] sm:$0xff] %v282_v62  ;;  %183 = vst [vmem:[#allocation8 + $0x28] sm:$0xff] %v169_v63  ;;  %v284_v0 = vpop.f32.mrb[5].mxu1 }
 0x129   :  { %299 = vst [vmem:[#allocation8 + $0x68] sm:$0xff] %v284_v0 }
 0x12a   :  { %v173_v1 = vpop.f32.mrb[6].mxu0 }
 0x12b   :  { %184 = vst [vmem:[#allocation8 + $0x30] sm:$0xff] %v173_v1  ;;  %v288_v2 = vpop.f32.mrb[6].mxu1  ;;  %v175_v3 = vpop.f32.mrb[7].mxu0 }
 0x12c   :  { %300 = vst [vmem:[#allocation8 + $0x70] sm:$0xff] %v288_v2  ;;  %185 = vst [vmem:[#allocation8 + $0x38] sm:$0xff] %v175_v3  ;;  %v290_v4 = vpop.f32.mrb[7].mxu1 }
 0x12d   :  { %301 = vst [vmem:[#allocation8 + $0x78] sm:$0xff] %v290_v4 }
 0x12e   :  { %446 = shalt.err (!%p443_p0)
}
 0x12f   :  { %s447_s29 = scalar_lea.hbm %s575_s3, 2048 }
 0x130   :  { %p448_p1 = scmp.ne.s32.totalorder %s575_s3, %s447_s29  ;;  %p451_p2 = scmp.lt.u32.totalorder %s447_s29, %s575_s3 }
 0x132   :  { %p453_p3 = pnand %p451_p2, %p448_p1 }
 0x134   :  { %456 = shalt.err (!%p453_p3)
}
 0x135   :  { %313 = dma.vmem_to_hbm [thread:$0]  %s308_s23, 2048, %s575_s3, [#allocation4], %s465_s24, %s465_s24, %s466_s25  }
 0x136   :  { %461 = dma.done.wait [#allocation4], 2048  }
 0x137   :  { %462 = vsyncadd [#allocation4], 4294965248 }
 0x138   :  { %317 = vsyncpa [#allocation3], 1 }
 0x139   :  { %318 = vsyncpa [#allocation6], 1 }
 0x13a   :  { %319 = vsyncpa [#allocation4], 1 }

</bundles_post_ra>
